<compile_context>
chip_gen: v6e
topology: v6e:2x2x1
jax: 0.10.0
libtpu: 0.0.40
codegen_flags: <defaults>
</compile_context>

<pallas_src>
import functools

import jax
import jax.numpy as jnp
from jax.experimental import pallas as pl
from jax.experimental.pallas import tpu as pltpu


def _corr2d_kernel(w_ref, b_ref, x_ref, o_ref, *, kh, kw):
    # w_ref: (kh*kw,) f32 in SMEM, b_ref: (1,) f32 in SMEM
    # x_ref: (Hp, Wp) f32 in VMEM, o_ref: (Hp, Wp) f32 in VMEM (lane-dense)
    xv = x_ref[...]                      # single full-width load
    hp, wp = xv.shape

    acc = w_ref[0] * xv                  # (di, dj) = (0, 0) term
    # Kernel window is tiny and static -> fully unrolled at trace time.
    for idx in range(1, kh * kw):
        di, dj = divmod(idx, kw)
        shifted = xv
        if di:
            # shifted[i, :] = xv[(i + di) % Hp, :]  (sublane roll, XLU)
            shifted = pltpu.roll(shifted, shift=hp - di, axis=0)
        if dj:
            # shifted[:, j] = xv[:, (j + dj) % Wp]  (lane roll, XLU)
            shifted = pltpu.roll(shifted, shift=wp - dj, axis=1)
        acc = acc + w_ref[idx] * shifted

    # Full-width lane-dense store; bias added in the epilogue.
    o_ref[...] = acc + b_ref[0]


def conv2d_forward(x, weight, bias):
    """Pallas equivalent of Conv2D.forward: corr2d(x, weight) + bias."""
    h, w = x.shape
    kh, kw = weight.shape
    ho, wo = h - kh + 1, w - kw + 1

    # Lane/sublane-dense padding of the single 2-D map.
    hp = pl.cdiv(h, 8) * 8
    wp = pl.cdiv(w, 128) * 128
    x_pad = jnp.zeros((hp, wp), jnp.float32).at[:h, :w].set(
        x.astype(jnp.float32))

    w_flat = weight.astype(jnp.float32).reshape(-1)     # (kh*kw,) SMEM scalars
    b_flat = bias.astype(jnp.float32).reshape(-1)       # (1,)     SMEM scalar

    kernel = functools.partial(_corr2d_kernel, kh=kh, kw=kw)
    y_pad = pl.pallas_call(
        kernel,
        out_shape=jax.ShapeDtypeStruct((hp, wp), jnp.float32),
        in_specs=[
            pl.BlockSpec(memory_space=pltpu.MemorySpace.SMEM),   # weight
            pl.BlockSpec(memory_space=pltpu.MemorySpace.SMEM),   # bias
            pl.BlockSpec(memory_space=pltpu.MemorySpace.VMEM),   # x (padded)
        ],
        out_specs=pl.BlockSpec(memory_space=pltpu.MemorySpace.VMEM),
    )(w_flat, b_flat, x_pad)

    # Crop away the padded (circular-wrap-contaminated) region.
    return y_pad[:ho, :wo]


def _corr2d_ref(x, weight, bias):
    """Pure-JAX reference matching the PyTorch corr2d loop."""
    h, w = x.shape
    kh, kw = weight.shape
    ho, wo = h - kh + 1, w - kw + 1
    out = jnp.zeros((ho, wo), jnp.float32)
    for i in range(ho):
        for j in range(wo):
            out = out.at[i, j].set(jnp.sum(x[i:i + kh, j:j + kw] * weight))
    return out + bias[0]


if __name__ == "__main__":
    key = jax.random.PRNGKey(0)
    kx, kw_key = jax.random.split(key)

    # --- Case 1: the d2l edge-detection example (X 6x8, K = [[1, -1]]) ---
    x_edges = jnp.ones((6, 8), dtype=jnp.float32).at[:, 2:6].set(0.0)
    k_fixed = jnp.array([[1.0, -1.0]], dtype=jnp.float32)
    b_zero = jnp.zeros((1,), dtype=jnp.float32)

    y1 = jax.block_until_ready(conv2d_forward(x_edges, k_fixed, b_zero))
    y1_ref = _corr2d_ref(x_edges, k_fixed, b_zero)
    assert y1.shape == (6, 7) and y1.dtype == jnp.float32
    assert jnp.allclose(y1, y1_ref, atol=1e-5, rtol=1e-5)

    # --- Case 2: Conv2D module init (torch.rand weight (1,2), zero bias) ---
    x_rand = jax.random.normal(kx, (6, 8), dtype=jnp.float32)
    w_rand = jax.random.uniform(kw_key, (1, 2), dtype=jnp.float32)
    y2 = jax.block_until_ready(conv2d_forward(x_rand, w_rand, b_zero))
    y2_ref = _corr2d_ref(x_rand, w_rand, b_zero)
    assert y2.shape == (6, 7) and y2.dtype == jnp.float32
    assert jnp.allclose(y2, y2_ref, atol=1e-5, rtol=1e-5)

    # --- Case 3: exercise the sublane (row) roll path with a (2, 2) kernel ---
    w_2x2 = jax.random.uniform(kw_key, (2, 2), dtype=jnp.float32)
    b_rand = jnp.array([0.25], dtype=jnp.float32)
    y3 = jax.block_until_ready(conv2d_forward(x_rand, w_2x2, b_rand))
    y3_ref = _corr2d_ref(x_rand, w_2x2, b_rand)
    assert y3.shape == (5, 7) and y3.dtype == jnp.float32
    assert jnp.allclose(y3, y3_ref, atol=1e-5, rtol=1e-5)

    print("KERNEL_OK")
</pallas_src>

<mosaic_0001>
module attributes {stable_mosaic.version = 11 : i64} {
  func.func @_corr2d_kernel(%arg0: memref<2xf32, #tpu.memory_space<smem>>, %arg1: memref<1xf32, #tpu.memory_space<smem>>, %arg2: memref<8x128xf32, #tpu.memory_space<vmem>>, %arg3: memref<8x128xf32, #tpu.memory_space<vmem>>) attributes {dimension_semantics = [], scalar_prefetch = 0 : i64, scratch_operands = 0 : i64, tpu.core_type = #tpu.core_type<tc>} {
    %c0 = arith.constant 0 : index
    %c0_0 = arith.constant 0 : index
    %0 = vector.load %arg2[%c0, %c0_0] : memref<8x128xf32, #tpu.memory_space<vmem>>, vector<8x128xf32>
    %c0_1 = arith.constant 0 : index
    %1 = memref.load %arg0[%c0_1] : memref<2xf32, #tpu.memory_space<smem>>
    %2 = vector.broadcast %1 : f32 to vector<8x128xf32>
    %3 = arith.mulf %2, %0 : vector<8x128xf32>
    %c127_i32 = arith.constant 127 : i32
    %4 = tpu.dynamic_rotate %0 by %c127_i32 dim 1 : vector<8x128xf32>, i32 -> vector<8x128xf32>
    %c1 = arith.constant 1 : index
    %5 = memref.load %arg0[%c1] : memref<2xf32, #tpu.memory_space<smem>>
    %6 = vector.broadcast %5 : f32 to vector<8x128xf32>
    %7 = arith.mulf %6, %4 : vector<8x128xf32>
    %8 = arith.addf %3, %7 : vector<8x128xf32>
    %c0_2 = arith.constant 0 : index
    %9 = memref.load %arg1[%c0_2] : memref<1xf32, #tpu.memory_space<smem>>
    %10 = vector.broadcast %9 : f32 to vector<8x128xf32>
    %11 = arith.addf %8, %10 : vector<8x128xf32>
    %c0_3 = arith.constant 0 : index
    %c0_4 = arith.constant 0 : index
    %12 = vector.load %arg3[%c0_3, %c0_4] : memref<8x128xf32, #tpu.memory_space<vmem>>, vector<8x128xf32>
    tpu.vector_store %arg3[%c0_3, %c0_4], %11 {strides = array<i32>} : memref<8x128xf32, #tpu.memory_space<vmem>>, vector<8x128xf32>,
    return
  }
}

</mosaic_0001>

<bundles_post_ra>
// kernel: tpu_custom_call.1
= control target key start
LH: loop header
LB: loop body
LE: loop exit
PB: predicated region body
PF: predicated region fallthrough
CT: control target
= control target key end

     0   :  { %9 = vsyncpa [#allocation6], 0  ;;  %s170_s0 = inlined_call_operand.vmem [shape: f32[2], index: 0, kind: input, shape index: {}]   ;;  %s171_s1 = inlined_call_operand.<no memory space> [shape: f32[1], index: 1, kind: input, shape index: {}]   ;;  %s172_s2 = inlined_call_operand.hbm [shape: f32[8,128], index: 2, kind: input, shape index: {}]   ;;  %s173_s3 = inlined_call_operand.hbm [shape: f32[8,128], index: 3, kind: output, shape index: {}]  }
   0x1   :  { %10 = vsyncpa [#allocation4], 0 }
   0x2   :  { %11 = vsyncpa [#allocation5], 0  ;;  %s18_s14 = sshll.u32 %s170_s0, 4  ;;  %s19_s14 = int_to_ptr.vmem [resolvable:$true] %s18_s14 }
   0x3   :  { %s76_s15 = scalar_lea.vmem %s19_s14, 16  ;;  %p81_p1 = scmp.lt.s32.totalorder %s19_s14, %s19_s14 }
   0x4   :  { %p77_p0 = scmp.ne.s32.totalorder %s19_s14, %s76_s15  ;;  %p82_p2 = scmp.lt.s32.totalorder %s76_s15, %s76_s15 }
   0x6   :  { %p83_p3 = por %p82_p2, %p81_p1 }
   0x8   :  { %p84_p4 = pnand %p83_p3, %p77_p0 }
   0xa   :  { %87 = shalt.err (!%p84_p4)
}
   0xb   :  { %s134_s16 = smov [#allocation3]   ;;  %s135_s17 = smov [#allocation7]  }
   0xc   :  { %21 = dma.vmem_to_smem %s19_s14, 16, %s134_s16, [#allocation6]  }
   0xd   :  { %s30_s18 = sshll.u32 %s135_s17, 4  ;;  %s31_s18 = int_to_ptr.vmem [resolvable:$true] %s30_s18 }
   0xe   :  { %s96_s19 = scalar_lea.vmem %s31_s18, 128  ;;  %p101_p6 = scmp.lt.s32.totalorder %s31_s18, %s31_s18 }
   0xf   :  { %p97_p5 = scmp.ne.s32.totalorder %s31_s18, %s96_s19  ;;  %p102_p7 = scmp.lt.s32.totalorder %s96_s19, %s96_s19 }
  0x11   :  { %p103_p8 = por %p102_p7, %p101_p6 }
  0x13   :  { %p104_p9 = pnand %p103_p8, %p97_p5 }
  0x15   :  { %107 = shalt.err (!%p104_p9)
}
  0x16   :  { %33 = dma.hbm_to_vmem [thread:$0]  %s172_s2, 128, %s31_s18, [#allocation4]  }
  0x17   :  { %128 = dma.done.wait [#allocation6], 16  }
  0x18   :  { %129 = vsyncadd [#allocation6], 4294967280 }
  0x19   :  { %130 = dma.done.wait [#allocation4], 128  }
  0x1a   :  { %131 = vsyncadd [#allocation4], 4294967168 }
  0x1b   :  { %40 = sfence }
  0x1c   :  { %v41_v0 = vld [vmem:[#allocation7] sm:$0xff]  ;;  %s136_s21 = smov 127   ;;  %s42_s22 = sld [smem:[#allocation3]]  ;;  %v52_v6 = vstv %s171_s1 }
  0x1d   :  { %45 = vrot.lane.b32.xlu0 %v41_v0, %s136_s21  ;;  %s71_s23 = sld [smem:[#allocation3 + $0x1]]  ;;  %s137_s2 = smov [#allocation8]  }
  0x1e   :  { %s61_s26 = sshll.u32 %s137_s2, 4  ;;  %s62_s26 = int_to_ptr.vmem [resolvable:$true] %s61_s26 }
  0x1f   :  { %s108_s27 = scalar_lea.vmem %s62_s26, 128  ;;  %p113_p11 = scmp.lt.s32.totalorder %s62_s26, %s62_s26 }
  0x20   :  { %p109_p10 = scmp.ne.s32.totalorder %s62_s26, %s108_s27  ;;  %p114_p12 = scmp.lt.s32.totalorder %s108_s27, %s108_s27 }
  0x22   :  { %v43_v1 = vstv %s42_s22  ;;  %p115_p13 = por %p114_p12, %p113_p11 }
  0x23   :  { %v48_v2 = vstv %s71_s23  ;;  %v44_v3 = vmul.f32 %v43_v1, %v41_v0 }
  0x24   :  { %p116_p0 = pnand %p115_p13, %p109_p10 }
  0x8f   :  { %v46_v4 = vpop.permute.xlu0 %45 }
  0x90   :  { %v49_v5 = vmul.f32 %v48_v2, %v46_v4 }
  0x92   :  { %v50_v7 = vadd.f32 %v49_v5, %v44_v3 }
  0x94   :  { %v53_v8 = vadd.f32 %v52_v6, %v50_v7 }
  0x96   :  { %54 = vst [vmem:[#allocation8] sm:$0xff] %v53_v8 }
  0x97   :  { %119 = shalt.err (!%p116_p0)
}
  0x98   :  { %64 = dma.vmem_to_hbm [thread:$0]  %s62_s26, 128, %s173_s3, [#allocation5]  }
  0x99   :  { %132 = dma.done.wait [#allocation5], 128  }
  0x9a   :  { %133 = vsyncadd [#allocation5], 4294967168 }
  0x9b   :  { %68 = vsyncpa [#allocation4], 1 }
  0x9c   :  { %69 = vsyncpa [#allocation5], 1 }
  0x9d   :  { %70 = vsyncpa [#allocation6], 1 }

</bundles_post_ra>
